<compile_context>
chip_gen: v7x
topology: tpu7x:2x2x1
jax: 0.10.0
libtpu: 0.0.40
codegen_flags: <defaults>
</compile_context>

<pallas_src>
import functools

import jax
import jax.numpy as jnp
from jax.experimental import pallas as pl
from jax.experimental.pallas import tpu as pltpu

_LANES = 128
_BLOCK_BYTES_TARGET = 8 * 1024 * 1024      # per input block (Pallas double-buffers it)
_VMEM_LIMIT_CAP = 56 * 1024 * 1024         # stay under v7x's 64 MiB physical VMEM
_SYM_VMEM_BUDGET = 40 * 1024 * 1024        # budget for the fused symmetric kernel


def _largest_divisor_leq(n, cap):
    cap = max(1, min(n, cap))
    for d in range(cap, 0, -1):
        if n % d == 0:
            return d
    return 1


def _neg_fill(dtype):
    # identity element of max() used when masking garbage tail rows
    if jnp.issubdtype(dtype, jnp.floating):
        return float("-inf")
    return int(jnp.iinfo(dtype).min)


def _sublane_multiple(dtype):
    itemsize = jnp.dtype(dtype).itemsize
    if itemsize >= 4:
        return 8
    if itemsize == 2:
        return 16
    return 32


def _lane_chunks(hw):
    """Split the lane axis across TensorCores only on multi-TC chips (v7x)."""
    try:
        kind = jax.devices()[0].device_kind.lower()
    except Exception:
        return 1
    if ("v7" not in kind) and ("7x" not in kind):
        return 1
    return 2 if (hw % (2 * _LANES) == 0) else 1


def _choose_blocks(N, M, hw_chunk, dtype, block_bytes):
    """(bn, bm) so the (bn, bm, hw_chunk) block is ~block_bytes and layout-legal."""
    itemsize = jnp.dtype(dtype).itemsize
    sub = _sublane_multiple(dtype)
    row_bytes = max(1, hw_chunk * itemsize)
    max_rows = max(1, block_bytes // row_bytes)          # budget on bn * bm
    if M <= max_rows:
        bm = M                                           # full M is always legal
    else:
        bm = min(M, max(sub, (max_rows // sub) * sub))   # dtype-aware sublane multiple
    bn = max(1, min(N, max_rows // bm))
    return bn, bm


def _vmem_limit(in_block_bytes, out_block_bytes, scratch_bytes):
    need = 2 * in_block_bytes + 2 * out_block_bytes + scratch_bytes
    return int(min(_VMEM_LIMIT_CAP, max(need + (4 << 20), 32 << 20)))


def _chamfer_kernel(s_ref, o_ref, runmax_ref, acc_ref, *,
                    n_total, m_total, inv_n, neg_fill):
    """out = mean over N of (max over M), streamed as (lane-chunk, N-block, M-block)."""
    ni = pl.program_id(1)
    mi = pl.program_id(2)
    last_n = pl.num_programs(1) - 1
    last_m = pl.num_programs(2) - 1
    bn, bm, _ = s_ref.shape

    @pl.when(jnp.logical_and(ni == 0, mi == 0))
    def _():
        acc_ref[...] = jnp.zeros_like(acc_ref)

    @pl.when(mi == 0)
    def _():
        runmax_ref[...] = jnp.full_like(runmax_ref, -jnp.inf)

    blk = s_ref[...]                                        # (bn, bm, hwc), input dtype
    if m_total % bm != 0:                                   # static gate: M tail block
        m_idx = jax.lax.broadcasted_iota(jnp.int32, (1, bm, 1), 1)
        blk = jnp.where(m_idx < (m_total - mi * bm), blk, neg_fill)

    # max over the M rows in the input dtype (exact); cast only the reduced tile to f32
    runmax_ref[...] = jnp.maximum(runmax_ref[...],
                                  jnp.max(blk, axis=1).astype(jnp.float32))

    # only fold the COMPLETED max into the running sum (avoids summing partial maxima)
    @pl.when(mi == last_m)
    def _():
        rm = runmax_ref[...]
        if n_total % bn != 0:                               # static gate: N tail block
            n_idx = jax.lax.broadcasted_iota(jnp.int32, (bn, 1), 0)
            rm = jnp.where(n_idx < (n_total - ni * bn), rm, 0.0)
        acc_ref[...] += jnp.sum(rm, axis=0, keepdims=True)

    @pl.when(jnp.logical_and(ni == last_n, mi == last_m))
    def _():
        o_ref[...] = (acc_ref[...] * inv_n).astype(o_ref.dtype)


def _chamfer_sym_kernel(s_ref, o_ref, acc_ref, runmax_ref, *,
                        stream_block_axis, inv_stream, inv_res):
    """Fused symmetric chamfer: one HBM pass computes both reduction orders.

    The resident axis is fully present in every block; the streamed axis is read
    in chunks across grid axis 1.  `acc` sums max-over-resident per streamed row;
    `runmax` keeps the running max over the streamed axis per resident row.
    """
    si = pl.program_id(1)
    res_block_axis = 1 - stream_block_axis

    @pl.when(si == 0)
    def _():
        acc_ref[...] = jnp.zeros_like(acc_ref)
        runmax_ref[...] = jnp.full_like(runmax_ref, -jnp.inf)

    blk = s_ref[...]
    # mean over the streamed axis of (max over the resident axis)
    acc_ref[...] += jnp.sum(jnp.max(blk, axis=res_block_axis).astype(jnp.float32),
                            axis=0, keepdims=True)
    # mean over the resident axis of (max over the streamed axis): running max
    runmax_ref[...] = jnp.maximum(runmax_ref[...],
                                  jnp.max(blk, axis=stream_block_axis).astype(jnp.float32))

    @pl.when(si == pl.num_programs(1) - 1)
    def _():
        mean_stream = acc_ref[...] * inv_stream
        mean_res = jnp.sum(runmax_ref[...], axis=0, keepdims=True) * inv_res
        o_ref[...] = ((mean_stream + mean_res) * 0.5).astype(o_ref.dtype)


def _chamfer_pallas(s, block_bytes=None):
    """mean over axis 0 of max over axis 1 of a (N, M, H, W) tensor -> (H, W)."""
    N, M, H, W = s.shape
    hw = H * W
    s2 = s.reshape(N, M, hw)                    # free reshape, no extra HBM pass
    dtype = s2.dtype
    itemsize = dtype.itemsize
    block_bytes = int(block_bytes or _BLOCK_BYTES_TARGET)

    chunks = _lane_chunks(hw)
    hwc = hw // chunks
    bn, bm = _choose_blocks(N, M, hwc, dtype, block_bytes)
    grid = (chunks, pl.cdiv(N, bn), pl.cdiv(M, bm))

    vmem_limit = _vmem_limit(bn * bm * hwc * itemsize, hwc * itemsize,
                             (bn + 1) * hwc * 4)

    out = pl.pallas_call(
        functools.partial(_chamfer_kernel, n_total=N, m_total=M,
                          inv_n=1.0 / N, neg_fill=_neg_fill(dtype)),
        out_shape=jax.ShapeDtypeStruct((1, hw), dtype),
        grid_spec=pltpu.PrefetchScalarGridSpec(
            num_scalar_prefetch=0,
            grid=grid,
            in_specs=[pl.BlockSpec((bn, bm, hwc), lambda c, n, m: (n, m, c))],
            out_specs=pl.BlockSpec((1, hwc), lambda c, n, m: (0, c)),
            scratch_shapes=[pltpu.VMEM((bn, hwc), jnp.float32),   # running max over M
                            pltpu.VMEM((1, hwc), jnp.float32)],   # running sum over N
        ),
        compiler_params=pltpu.CompilerParams(
            dimension_semantics=("parallel", "arbitrary", "arbitrary"),
            vmem_limit_bytes=vmem_limit),
        cost_estimate=pl.CostEstimate(
            flops=N * M * hw + N * hw, transcendentals=0,
            bytes_accessed=N * M * hw * itemsize + hw * itemsize),
    )(s2)
    return out.reshape(H, W)


def _chamfer_sym_pallas(s, block_bytes=None, sym_vmem_budget=_SYM_VMEM_BUDGET):
    """( mean_0(max_1(s)) + mean_1(max_0(s)) ) / 2 in a single HBM pass."""
    N, M, H, W = s.shape
    hw = H * W
    s2 = s.reshape(N, M, hw)
    dtype = s2.dtype
    itemsize = dtype.itemsize
    block_bytes = int(block_bytes or _BLOCK_BYTES_TARGET)
    sub = _sublane_multiple(dtype)

    chunks = _lane_chunks(hw)
    hwc = hw // chunks

    # Keep the fully resident f32 max-scratch on the smaller of the two axes.
    if M <= N:
        stream_axis, res_size, stream_size = 0, M, N     # stream N, M resident
    else:
        stream_axis, res_size, stream_size = 1, N, M     # stream M, N resident

    max_rows = max(1, block_bytes // max(1, hwc * itemsize))
    bs_cap = max(1, max_rows // res_size)
    if stream_axis == 0:
        bs = _largest_divisor_leq(stream_size, bs_cap)   # leading dim: any divisor OK
    else:
        if stream_size <= bs_cap:
            bs = stream_size
        else:                                            # 2nd-to-last dim: multiple of sub
            bs = 0
            d = (min(bs_cap, stream_size) // sub) * sub
            while d >= sub:
                if stream_size % d == 0:
                    bs = d
                    break
                d -= sub

    in_block_bytes = res_size * max(bs, 1) * hwc * itemsize
    scratch_bytes = (res_size + 1) * hwc * 4
    vmem_need = 2 * in_block_bytes + 2 * hwc * itemsize + scratch_bytes
    if bs == 0 or vmem_need > sym_vmem_budget:
        # Resident scratch / full-axis block won't fit: two streaming passes instead.
        a = _chamfer_pallas(s, block_bytes=block_bytes)                      # mean_0(max_1)
        b = _chamfer_pallas(jnp.swapaxes(s, 0, 1), block_bytes=block_bytes)  # mean_1(max_0)
        return ((a.astype(jnp.float32) + b.astype(jnp.float32)) * 0.5).astype(dtype)

    if stream_axis == 0:
        blk_shape = (bs, res_size, hwc)
        index_map = lambda c, i: (i, 0, c)
    else:
        blk_shape = (res_size, bs, hwc)
        index_map = lambda c, i: (0, i, c)

    vmem_limit = _vmem_limit(in_block_bytes, hwc * itemsize, scratch_bytes)

    out = pl.pallas_call(
        functools.partial(_chamfer_sym_kernel, stream_block_axis=stream_axis,
                          inv_stream=1.0 / stream_size, inv_res=1.0 / res_size),
        out_shape=jax.ShapeDtypeStruct((1, hw), dtype),
        grid_spec=pltpu.PrefetchScalarGridSpec(
            num_scalar_prefetch=0,
            grid=(chunks, stream_size // bs),
            in_specs=[pl.BlockSpec(blk_shape, index_map)],
            out_specs=pl.BlockSpec((1, hwc), lambda c, i: (0, c)),
            scratch_shapes=[pltpu.VMEM((1, hwc), jnp.float32),          # sum term
                            pltpu.VMEM((res_size, hwc), jnp.float32)],  # resident max term
        ),
        compiler_params=pltpu.CompilerParams(
            dimension_semantics=("parallel", "arbitrary"),
            vmem_limit_bytes=vmem_limit),
        cost_estimate=pl.CostEstimate(
            flops=2 * N * M * hw, transcendentals=0,
            bytes_accessed=N * M * hw * itemsize + hw * itemsize),
    )(s2)
    return out.reshape(H, W)


def chamfer_similarity(s, symmetric=False, axes=(1, 0), block_bytes=None):
    """JAX/Pallas equivalent of ChamferSimilarity(symmetric, axes).forward(s).

    s: (N, M, H, W). axes[0] is the max axis, axes[1] the mean axis (in {0, 1}).
    Returns an (H, W) array in s.dtype.
    # TODO(synk): PyTorch errors on integer mean; here integer inputs are mean'd
    # in f32 and truncated back to the integer dtype.
    """
    axes = tuple(axes)
    assert sorted(axes) == [0, 1], "axes must be a permutation of (0, 1)"
    if symmetric:
        return _chamfer_sym_pallas(s, block_bytes=block_bytes)   # order-independent
    if axes == (1, 0):                                           # module default
        return _chamfer_pallas(s, block_bytes=block_bytes)
    # non-default axes=(0, 1): max over axis 0, mean over axis 1.
    # TODO(synk): rare path; pays one HBM transpose instead of a dedicated BlockSpec.
    return _chamfer_pallas(jnp.swapaxes(s, 0, 1), block_bytes=block_bytes)


def _ref_chamfer(s):
    f = s.astype(jnp.float32)
    return jnp.mean(jnp.max(f, axis=1), axis=0)


def _ref_sym(s):
    f = s.astype(jnp.float32)
    return (jnp.mean(jnp.max(f, axis=1), axis=0) + jnp.mean(jnp.max(f, axis=0), axis=0)) / 2


def _check(name, got, want, tol):
    got = jnp.asarray(got, jnp.float32)
    want = jnp.asarray(want, jnp.float32)
    assert got.shape == want.shape, (name, got.shape, want.shape)
    err = float(jnp.max(jnp.abs(got - want)))
    assert jnp.allclose(got, want, atol=tol, rtol=tol), (name, err)


if __name__ == "__main__":
    key = jax.random.PRNGKey(0)
    ks = jax.random.split(key, 8)

    # 1) lane-aligned spatial dims (8*16 = 128)
    s = jax.random.normal(ks[0], (6, 10, 8, 16), dtype=jnp.float32)
    _check("default", jax.block_until_ready(chamfer_similarity(s)), _ref_chamfer(s), 1e-5)
    _check("symmetric", jax.block_until_ready(chamfer_similarity(s, symmetric=True)),
           _ref_sym(s), 1e-5)
    _check("axes01", jax.block_until_ready(chamfer_similarity(s, axes=(0, 1))),
           jnp.mean(jnp.max(s, axis=0), axis=0), 1e-5)

    # 2) ragged spatial dims (H*W = 27): no host-side padding pass any more
    t = jax.random.normal(ks[1], (5, 7, 3, 9), dtype=jnp.float32)
    _check("ragged", jax.block_until_ready(chamfer_similarity(t)), _ref_chamfer(t), 1e-5)
    _check("ragged_sym", jax.block_until_ready(chamfer_similarity(t, symmetric=True)),
           _ref_sym(t), 1e-5)

    # 3) bf16 input -> bf16 max + f32 accumulation inside the kernel
    sb = s.astype(jnp.bfloat16)
    outb = jax.block_until_ready(chamfer_similarity(sb))
    assert outb.dtype == jnp.bfloat16
    _check("bf16", outb, _ref_chamfer(sb), 2e-2)

    # 4) H*W multiple of 256: exercises the 2-TensorCore lane-chunk split on v7x
    x = jax.random.normal(ks[2], (4, 6, 16, 16), dtype=jnp.float32)
    _check("chunked", jax.block_until_ready(chamfer_similarity(x)), _ref_chamfer(x), 1e-5)

    # 5) tiny block budget -> cdiv grids with masked tail blocks
    u = jax.random.normal(ks[3], (13, 4, 2, 5), dtype=jnp.float32)      # N-axis tail
    _check("n_tail", jax.block_until_ready(chamfer_similarity(u, block_bytes=1280)),
           _ref_chamfer(u), 1e-5)
    v = jax.random.normal(ks[4], (3, 40, 2, 5), dtype=jnp.float32)      # M-axis tail
    _check("m_tail", jax.block_until_ready(chamfer_similarity(v, block_bytes=1280)),
           _ref_chamfer(v), 1e-5)

    # 6) symmetric kernel, both resident-axis orientations, streamed in blocks
    w1 = jax.random.normal(ks[5], (12, 4, 2, 5), dtype=jnp.float32)     # resident = M
    _check("sym_res_M",
           jax.block_until_ready(chamfer_similarity(w1, symmetric=True, block_bytes=1280)),
           _ref_sym(w1), 1e-5)
    w2 = jax.random.normal(ks[6], (4, 16, 2, 5), dtype=jnp.float32)     # resident = N
    _check("sym_res_N",
           jax.block_until_ready(chamfer_similarity(w2, symmetric=True, block_bytes=1280)),
           _ref_sym(w2), 1e-5)

    # 7) symmetric fallback (VMEM budget exhausted -> two streaming passes)
    _check("sym_fallback",
           jax.block_until_ready(_chamfer_sym_pallas(w1, block_bytes=1280, sym_vmem_budget=1)),
           _ref_sym(w1), 1e-5)

    print("KERNEL_OK")
</pallas_src>

<mosaic_0001>
module attributes {stable_mosaic.version = 11 : i64} {
  func.func @_chamfer_kernel(%arg0: i32, %arg1: i32, %arg2: i32, %arg3: memref<6x10x128xf32, #tpu.memory_space<vmem>>, %arg4: memref<1x128xf32, #tpu.memory_space<vmem>>, %arg5: memref<6x128xf32, #tpu.memory_space<vmem>>, %arg6: memref<1x128xf32, #tpu.memory_space<vmem>>) attributes {dimension_semantics = [#tpu.dimension_semantics<parallel>, #tpu.dimension_semantics<arbitrary>, #tpu.dimension_semantics<arbitrary>], iteration_bounds = array<i64: 1, 1, 1>, scalar_prefetch = 0 : i64, scratch_operands = 2 : i64, tpu.core_type = #tpu.core_type<tc>, window_params = [{transform_indices = @transform_0, window_bounds = array<i64: 6, 10, 128>}, {transform_indices = @transform_1, window_bounds = array<i64: 1, 128>}]} {
    %c0_i32 = arith.constant 0 : i32
    %0 = arith.cmpi eq, %arg1, %c0_i32 : i32
    %c0_i32_0 = arith.constant 0 : i32
    %1 = arith.cmpi eq, %arg2, %c0_i32_0 : i32
    %2 = arith.andi %0, %1 : i1
    %3 = arith.extui %2 : i1 to i32
    %c0_i32_1 = arith.constant 0 : i32
    %4 = arith.cmpi ne, %3, %c0_i32_1 : i32
    scf.if %4 {
      %cst_15 = arith.constant 0.000000e+00 : f32
      %21 = vector.broadcast %cst_15 : f32 to vector<1x128xf32>
      %c0_16 = arith.constant 0 : index
      %c0_17 = arith.constant 0 : index
      %22 = vector.load %arg6[%c0_16, %c0_17] : memref<1x128xf32, #tpu.memory_space<vmem>>, vector<1x128xf32>
      tpu.vector_store %arg6[%c0_16, %c0_17], %21 {strides = array<i32>} : memref<1x128xf32, #tpu.memory_space<vmem>>, vector<1x128xf32>,
    } else {
    }
    %c0_i32_2 = arith.constant 0 : i32
    %5 = arith.cmpi eq, %arg2, %c0_i32_2 : i32
    %6 = arith.extui %5 : i1 to i32
    %c0_i32_3 = arith.constant 0 : i32
    %7 = arith.cmpi ne, %6, %c0_i32_3 : i32
    scf.if %7 {
      %cst_15 = arith.constant 0xFF800000 : f32
      %21 = vector.broadcast %cst_15 : f32 to vector<6x128xf32>
      %c0_16 = arith.constant 0 : index
      %c0_17 = arith.constant 0 : index
      %22 = vector.load %arg5[%c0_16, %c0_17] : memref<6x128xf32, #tpu.memory_space<vmem>>, vector<6x128xf32>
      tpu.vector_store %arg5[%c0_16, %c0_17], %21 {strides = array<i32>} : memref<6x128xf32, #tpu.memory_space<vmem>>, vector<6x128xf32>,
    } else {
    }
    %c0 = arith.constant 0 : index
    %c0_4 = arith.constant 0 : index
    %c0_5 = arith.constant 0 : index
    %8 = vector.load %arg3[%c0, %c0_4, %c0_5] : memref<6x10x128xf32, #tpu.memory_space<vmem>>, vector<6x10x128xf32>
    %c0_6 = arith.constant 0 : index
    %c0_7 = arith.constant 0 : index
    %9 = vector.load %arg5[%c0_6, %c0_7] : memref<6x128xf32, #tpu.memory_space<vmem>>, vector<6x128xf32>
    %cst = arith.constant dense<0xFF800000> : vector<6x128xf32>
    %10 = vector.multi_reduction <maximumf>, %8, %cst [1] : vector<6x10x128xf32> to vector<6x128xf32>
    %11 = arith.maximumf %9, %10 : vector<6x128xf32>
    %c0_8 = arith.constant 0 : index
    %c0_9 = arith.constant 0 : index
    %12 = vector.load %arg5[%c0_8, %c0_9] : memref<6x128xf32, #tpu.memory_space<vmem>>, vector<6x128xf32>
    tpu.vector_store %arg5[%c0_8, %c0_9], %11 {strides = array<i32>} : memref<6x128xf32, #tpu.memory_space<vmem>>, vector<6x128xf32>,
    %c0_i32_10 = arith.constant 0 : i32
    %13 = arith.cmpi eq, %arg2, %c0_i32_10 : i32
    %14 = arith.extui %13 : i1 to i32
    %c0_i32_11 = arith.constant 0 : i32
    %15 = arith.cmpi ne, %14, %c0_i32_11 : i32
    scf.if %15 {
      %c0_15 = arith.constant 0 : index
      %c0_16 = arith.constant 0 : index
      %21 = vector.load %arg5[%c0_15, %c0_16] : memref<6x128xf32, #tpu.memory_space<vmem>>, vector<6x128xf32>
      %c0_17 = arith.constant 0 : index
      %c0_18 = arith.constant 0 : index
      %22 = vector.load %arg6[%c0_17, %c0_18] : memref<1x128xf32, #tpu.memory_space<vmem>>, vector<1x128xf32>
      %cst_19 = arith.constant dense<0.000000e+00> : vector<128xf32>
      %23 = vector.multi_reduction <add>, %21, %cst_19 [0] : vector<6x128xf32> to vector<128xf32>
      %24 = vector.shape_cast %23 : vector<128xf32> to vector<1x128xf32>
      %25 = arith.addf %22, %24 : vector<1x128xf32>
      %c0_20 = arith.constant 0 : index
      %c0_21 = arith.constant 0 : index
      %26 = vector.load %arg6[%c0_20, %c0_21] : memref<1x128xf32, #tpu.memory_space<vmem>>, vector<1x128xf32>
      tpu.vector_store %arg6[%c0_20, %c0_21], %25 {strides = array<i32>} : memref<1x128xf32, #tpu.memory_space<vmem>>, vector<1x128xf32>,
    } else {
    }
    %c0_i32_12 = arith.constant 0 : i32
    %16 = arith.cmpi eq, %arg1, %c0_i32_12 : i32
    %c0_i32_13 = arith.constant 0 : i32
    %17 = arith.cmpi eq, %arg2, %c0_i32_13 : i32
    %18 = arith.andi %16, %17 : i1
    %19 = arith.extui %18 : i1 to i32
    %c0_i32_14 = arith.constant 0 : i32
    %20 = arith.cmpi ne, %19, %c0_i32_14 : i32
    scf.if %20 {
      %c0_15 = arith.constant 0 : index
      %c0_16 = arith.constant 0 : index
      %21 = vector.load %arg6[%c0_15, %c0_16] : memref<1x128xf32, #tpu.memory_space<vmem>>, vector<1x128xf32>
      %cst_17 = arith.constant 0.166666672 : f32
      %22 = vector.broadcast %cst_17 : f32 to vector<1x128xf32>
      %23 = arith.mulf %21, %22 : vector<1x128xf32>
      %c0_18 = arith.constant 0 : index
      %c0_19 = arith.constant 0 : index
      %24 = vector.load %arg4[%c0_18, %c0_19] : memref<1x128xf32, #tpu.memory_space<vmem>>, vector<1x128xf32>
      tpu.vector_store %arg4[%c0_18, %c0_19], %23 {strides = array<i32>} : memref<1x128xf32, #tpu.memory_space<vmem>>, vector<1x128xf32>,
    } else {
    }
    return
  }
  func.func @transform_0(%arg0: i32, %arg1: i32, %arg2: i32) -> (i32, i32, i32) {
    %c0_i32 = arith.constant 0 : i32
    return %arg1, %arg2, %arg0 : i32, i32, i32
  }
  func.func @transform_1(%arg0: i32, %arg1: i32, %arg2: i32) -> (i32, i32) {
    %c0_i32 = arith.constant 0 : i32
    %c0_i32_0 = arith.constant 0 : i32
    return %c0_i32, %arg0 : i32, i32
  }
}

</mosaic_0001>

<bundles_post_ra>
// kernel: tpu_custom_call.1
= control target key start
LH: loop header
LB: loop body
LE: loop exit
PB: predicated region body
PF: predicated region fallthrough
CT: control target
= control target key end

     0   :  { %vm33_vm0 = vcmask 1041408   ;;  %v162_v3 = vmov -inf   ;;  %s229_s0 = inlined_call_operand.vmem [shape: f32[6,10,128], index: 0, kind: input, shape index: {}]   ;;  %s230_s1 = inlined_call_operand.hbm [shape: f32[1,128], index: 1, kind: output, shape index: {}]  }
   0x1   :  { %v20_v0 = vld [vmem:[%s229_s0] sm:$0xff]  ;;  %v21_v1 = vld [vmem:[%s229_s0 + $0x8] sm:$0x3]  ;;  %v22_v2 = vld [vmem:[%s229_s0 + $0x10] sm:$0xff]  ;;  %19 = vst [vmem:[#allocation2] sm:$0x3f] %v162_v3 }
   0x2   :  { %v23_v4 = vld [vmem:[%s229_s0 + $0x18] sm:$0x3]  ;;  %v24_v5 = vld [vmem:[%s229_s0 + $0x20] sm:$0xff]  ;;  %v25_v6 = vld [vmem:[%s229_s0 + $0x28] sm:$0x3]  ;;  %v34_v7 = vsel %vm33_vm0, %v21_v1, -inf }
   0x3   :  { %v26_v8 = vld [vmem:[%s229_s0 + $0x30] sm:$0xff]  ;;  %v27_v9 = vld [vmem:[%s229_s0 + $0x38] sm:$0x3]  ;;  %v28_v10 = vld [vmem:[%s229_s0 + $0x40] sm:$0xff]  ;;  %v35_v11 = vmax.f32 %v20_v0, %v34_v7  ;;  %v42_v12 = vsel %vm33_vm0, %v23_v4, -inf  ;;  %v50_v13 = vsel %vm33_vm0, %v25_v6, -inf }
   0x4   :  { %v29_v14 = vld [vmem:[%s229_s0 + $0x48] sm:$0x3]  ;;  %v30_v15 = vld [vmem:[%s229_s0 + $0x50] sm:$0xff]  ;;  %v31_v16 = vld [vmem:[%s229_s0 + $0x58] sm:$0x3]  ;;  %v43_v17 = vmax.f32 %v22_v2, %v42_v12  ;;  %v51_v18 = vmax.f32 %v24_v5, %v50_v13  ;;  %v58_v19 = vsel %vm33_vm0, %v27_v9, -inf }
   0x5   :  { %v36_v20 = vrot.slane %v35_v11, 4  ;;  %v59_v21 = vmax.f32 %v26_v8, %v58_v19  ;;  %v66_v22 = vsel %vm33_vm0, %v29_v14, -inf  ;;  %v74_v23 = vsel %vm33_vm0, %v31_v16, -inf }
   0x6   :  { %6 = vsyncpa [#allocation5], 0  ;;  %v44_v24 = vrot.slane %v43_v17, 4  ;;  %v52_v25 = vrot.slane %v51_v18, 4  ;;  %v67_v26 = vmax.f32 %v28_v10, %v66_v22  ;;  %v75_v27 = vmax.f32 %v30_v15, %v74_v23  ;;  %s164_s0 = smov [#allocation4]  }
   0x7   :  { %v37_v28 = vmax.f32 %v35_v11, %v36_v20  ;;  %v60_v29 = vrot.slane %v59_v21, 4  ;;  %v163_v46 = vmov 0.0   ;;  %vm88_vm1 = vcmask 1041409   ;;  %s127_s30 = sshll.u32 %s164_s0, 4  ;;  %s128_s30 = int_to_ptr.vmem [resolvable:$true] %s127_s30 }
   0x8   :  { %v45_v30 = vmax.f32 %v43_v17, %v44_v24  ;;  %v53_v31 = vmax.f32 %v51_v18, %v52_v25  ;;  %v68_v32 = vrot.slane %v67_v26, 4  ;;  %v76_v33 = vrot.slane %v75_v27, 4  ;;  %15 = vst [vmem:[#allocation3] sm:$0x1] %v163_v46  ;;  %v32_v0 = vld [vmem:[#allocation2] sm:$0x3f]  ;;  %p143_p1 = scmp.lt.s32.totalorder %s128_s30, %s128_s30 }
   0x9   :  { %v38_v34 = vrot.slane %v37_v28, 2  ;;  %v61_v35 = vmax.f32 %v59_v21, %v60_v29  ;;  %vm90_vm2 = vcmask 1042434   ;;  %vm92_vm3 = vcmask 1043459   ;;  %s138_s2 = scalar_lea.vmem %s128_s30, 16  ;;  %s142_s3 = scalar_lea.vmem %s128_s30, 32 }
   0xa   :  { %v46_v36 = vrot.slane %v45_v30, 2  ;;  %v54_v37 = vrot.slane %v53_v31, 2  ;;  %v69_v38 = vmax.f32 %v67_v26, %v68_v32  ;;  %v77_v39 = vmax.f32 %v75_v27, %v76_v33  ;;  %p139_p0 = scmp.ne.s32.totalorder %s128_s30, %s138_s2  ;;  %p144_p2 = scmp.lt.s32.totalorder %s142_s3, %s138_s2 }
   0xb   :  { %v39_v40 = vmax.f32 %v37_v28, %v38_v34  ;;  %v62_v41 = vrot.slane %v61_v35, 2  ;;  %vm94_vm4 = vcmask 1044484   ;;  %vm96_vm5 = vcmask 1045509  }
   0xc   :  { %v47_v42 = vmax.f32 %v45_v30, %v46_v36  ;;  %v55_v43 = vmax.f32 %v53_v31, %v54_v37  ;;  %v70_v44 = vrot.slane %v69_v38, 2  ;;  %v78_v45 = vrot.slane %v77_v39, 2  ;;  %p145_p3 = por %p144_p2, %p143_p1 }
   0xd   :  { %v40_v47 = vrot.slane %v39_v40, 1  ;;  %v63_v48 = vmax.f32 %v61_v35, %v62_v41  ;;  %vm106_vm6 = vcmask 1045504  }
   0xe   :  { %v48_v49 = vrot.slane %v47_v42, 1  ;;  %v56_v50 = vrot.slane %v55_v43, 1  ;;  %v71_v51 = vmax.f32 %v69_v38, %v70_v44  ;;  %v79_v52 = vmax.f32 %v77_v39, %v78_v45  ;;  %p146_p4 = pnand %p145_p3, %p139_p0 }
   0xf   :  { %v41_v53 = vmax.f32 %v39_v40, %v40_v47  ;;  %v64_v54 = vrot.slane %v63_v48, 1  ;;  %v105_v12 = vld [vmem:[#allocation3] sm:$0x1] }
  0x10   :  { %v49_v55 = vmax.f32 %v47_v42, %v48_v49  ;;  %v57_v56 = vmax.f32 %v55_v43, %v56_v50  ;;  %v72_v57 = vrot.slane %v71_v51, 1  ;;  %v80_v58 = vrot.slane %v79_v52, 1 }
  0x11   :  { %v65_v59 = vmax.f32 %v63_v48, %v64_v54 }
  0x12   :  { %v73_v60 = vmax.f32 %v71_v51, %v72_v57  ;;  %v81_v61 = vmax.f32 %v79_v52, %v80_v58  ;;  %v89_v62 = vsel %vm88_vm1, %v49_v55, %v41_v53 }
  0x13   :  { %v91_v63 = vsel %vm90_vm2, %v57_v56, %v89_v62 }
  0x14   :  { %v93_v1 = vsel %vm92_vm3, %v65_v59, %v91_v63 }
  0x15   :  { %v95_v2 = vsel %vm94_vm4, %v73_v60, %v93_v1 }
  0x16   :  { %v97_v3 = vsel %vm96_vm5, %v81_v61, %v95_v2 }
  0x17   :  { %v99_v4 = vmax.f32 %v32_v0, %v97_v3 }
  0x19   :  { %100 = vst [vmem:[#allocation2] sm:$0x3f] %v99_v4 }
  0x20   :  { %v104_v5 = vld [vmem:[#allocation2] sm:$0x3f] }
  0x21   :  { %v107_v6 = vsel %vm106_vm6, %v104_v5, 0.0 }
  0x22   :  { %v108_v7 = vrot.slane %v107_v6, 4 }
  0x24   :  { %v109_v8 = vadd.f32 %v108_v7, %v107_v6 }
  0x26   :  { %v110_v9 = vrot.slane %v109_v8, 2 }
  0x28   :  { %v111_v10 = vadd.f32 %v110_v9, %v109_v8 }
  0x2a   :  { %v112_v11 = vrot.slane %v111_v10, 1 }
  0x2c   :  { %v113_v13 = vadd.f32 %v112_v11, %v111_v10 }
  0x2e   :  { %v114_v14 = vadd.f32 %v113_v13, %v105_v12 }
  0x30   :  { %115 = vst [vmem:[#allocation3] sm:$0x1] %v114_v14 }
  0x37   :  { %v118_v15 = vld [vmem:[#allocation3] sm:$0x1] }
  0x38   :  { %v119_v16 = vmul.f32 0.16666667, %v118_v15 }
  0x3a   :  { %120 = vst [vmem:[#allocation4] sm:$0x1] %v119_v16 }
  0x3b   :  { %149 = shalt.err (!%p146_p4)
}
  0x3c   :  { %s150_s6 = scalar_lea.hbm %s230_s1, 16 }
  0x3d   :  { %p151_p5 = scmp.ne.s32.totalorder %s230_s1, %s150_s6  ;;  %p154_p6 = scmp.lt.u32.totalorder %s150_s6, %s230_s1 }
  0x3f   :  { %p156_p7 = pnand %p154_p6, %p151_p5 }
  0x41   :  { %159 = shalt.err (!%p156_p7)
}
  0x42   :  { %130 = dma.vmem_to_hbm [thread:$0]  %s128_s30, 16, %s230_s1, [#allocation5]  }
  0x43   :  { %160 = dma.done.wait [#allocation5], 16  }
  0x44   :  { %161 = vsyncadd [#allocation5], 4294967280 }
  0x45   :  { %134 = vsyncpa [#allocation5], 1 }

</bundles_post_ra>
